<compile_context>
chip_gen: v7x
topology: tpu7x:2x2x1
jax: 0.10.0
libtpu: 0.0.40
codegen_flags: <defaults>
</compile_context>

<pallas_src>
import jax
import jax.numpy as jnp
from jax.experimental import pallas as pl
from jax.experimental.pallas import tpu as pltpu


_BLOCK_BUDGET_BYTES = 2 << 20     # ~2 MiB per array block (~85% of HBM roofline)
_LANE = 128


def whiten2_kernel(x1_ref, x2_ref, x3_ref, y1_ref, y2_ref, mean_ref):
    # Compute in f32 (free on the mem-bound path; avoids bf16 VPU penalties on
    # v5e and matches torch's accumulation more closely for low-precision in).
    x1 = x1_ref[...].astype(jnp.float32)
    x2 = x2_ref[...].astype(jnp.float32)
    x3 = x3_ref[...].astype(jnp.float32)
    mean = (x1 + x2 + x3) * jnp.float32(1.0 / 3.0)   # multiply, not divide
    y1_ref[...] = (x1 - mean).astype(y1_ref.dtype)
    y2_ref[...] = (x2 - mean).astype(y2_ref.dtype)
    mean_ref[...] = mean.astype(mean_ref.dtype)
    # NOTE: y3 == x3 is returned by the wrapper; no extra HBM write here.


def _choose_tm(rows, width, itemsize):
    """Row-tile from a VMEM budget, multiple of 8, and >=2 grid steps if possible."""
    tm = max(8, (_BLOCK_BUDGET_BYTES // (width * itemsize)) // 8 * 8)
    if rows > 8:
        # Keep at least 2 grid iterations so the single "parallel" grid axis
        # can be sharded across v7x's two TensorCores (no-op on v5e/v6e).
        half = max(8, ((rows // 2) // 8) * 8)
        tm = min(tm, half)
    if tm >= rows:
        return rows          # single block equal to the full array extent
    return tm


def whiten2(x1, x2, x3, *, donate_inputs=False, min_pallas_elements=1 << 15):
    assert x1.shape == x2.shape == x3.shape
    assert x1.dtype == x2.dtype == x3.dtype
    orig_shape = x1.shape
    dtype = x1.dtype
    n = x1.size

    # Tiny inputs: a pallas_call's fixed overhead beats any kernel win.
    if n < min_pallas_elements:
        x1f = x1.astype(jnp.float32)
        x2f = x2.astype(jnp.float32)
        x3f = x3.astype(jnp.float32)
        meanf = (x1f + x2f + x3f) * (1.0 / 3.0)
        return ([(x1f - meanf).astype(dtype),
                 (x2f - meanf).astype(dtype),
                 x3],
                meanf.astype(dtype))

    # Choose a lane-dense 2-D view.  Reshape of a contiguous row-major array
    # is free, so flatten to (rows, 128) whenever the element count allows it;
    # otherwise keep the natural (M, D) view (block equals full last dim).
    if n % _LANE == 0:
        width = _LANE
    else:
        width = orig_shape[-1] if len(orig_shape) > 1 else n
    rows = n // width
    itemsize = jnp.dtype(dtype).itemsize

    tm = _choose_tm(rows, width, itemsize)
    grid = (pl.cdiv(rows, tm),)

    block_bytes = tm * width * itemsize
    # 3 inputs + 2 outputs, double-buffered, plus slack; cap well below v7x's
    # 64 MiB physical VMEM.
    vmem_limit = int(5 * 2 * block_bytes + (4 << 20))
    vmem_limit = max(16 << 20, min(vmem_limit, 40 << 20))

    spec = pl.BlockSpec((tm, width), lambda i: (i, 0))
    out_sds = jax.ShapeDtypeStruct((rows, width), dtype)

    # Optional buffer reuse (only pays off when callers donate x1/x2).
    io_aliases = {0: 0, 1: 1} if donate_inputs else {}

    to2d = lambda a: a.reshape(rows, width)

    y1, y2, mean = pl.pallas_call(
        whiten2_kernel,
        out_shape=(out_sds, out_sds, out_sds),
        grid_spec=pltpu.PrefetchScalarGridSpec(
            num_scalar_prefetch=0,
            grid=grid,
            in_specs=[spec, spec, spec],
            out_specs=[spec, spec, spec],
        ),
        compiler_params=pltpu.CompilerParams(
            dimension_semantics=("parallel",),
            vmem_limit_bytes=vmem_limit,
        ),
        input_output_aliases=io_aliases,
    )(to2d(x1), to2d(x2), to2d(x3))

    back = lambda a: a.reshape(orig_shape)
    # y3 is exactly x3: return the input, no HBM copy.
    return ([back(y1), back(y2), x3], back(mean))


if __name__ == "__main__":
    key = jax.random.PRNGKey(0)
    k1, k2, k3 = jax.random.split(key, 3)

    def ref(a, b, c):
        mean = jnp.mean(jnp.stack([a, b, c], axis=1), axis=1)
        return a - mean, b - mean, c, mean

    # Shapes consistent with the module's usage (modality feature vectors).
    # (2, 32): tiny, D<128 fallback view.  (8, 384): lane-dense (rows, 128)
    # view with a multi-step grid.
    for shape in [(2, 32), (8, 384)]:
        a = jax.random.normal(k1, shape, dtype=jnp.float32)
        b = jax.random.normal(k2, shape, dtype=jnp.float32)
        c = jax.random.normal(k3, shape, dtype=jnp.float32)

        # Force the pallas path even for the small example shapes.
        (y1, y2, y3), mean = whiten2(a, b, c, min_pallas_elements=0)
        jax.block_until_ready((y1, y2, y3, mean))

        r1, r2, r3, rm = ref(a, b, c)
        assert jnp.allclose(mean, rm, atol=1e-6)
        assert jnp.allclose(y1, r1, atol=1e-6)
        assert jnp.allclose(y2, r2, atol=1e-6)
        assert jnp.allclose(y3, r3, atol=0.0)

    # Also sanity-check the tiny-input jnp fallback path (default threshold).
    a = jax.random.normal(k1, (2, 32), dtype=jnp.float32)
    b = jax.random.normal(k2, (2, 32), dtype=jnp.float32)
    c = jax.random.normal(k3, (2, 32), dtype=jnp.float32)
    (y1, y2, y3), mean = whiten2(a, b, c)
    jax.block_until_ready((y1, y2, y3, mean))
    r1, r2, r3, rm = ref(a, b, c)
    assert jnp.allclose(mean, rm, atol=1e-6)
    assert jnp.allclose(y1, r1, atol=1e-6)
    assert jnp.allclose(y2, r2, atol=1e-6)

    print("KERNEL_OK")
</pallas_src>

<mosaic_0001>
module attributes {stable_mosaic.version = 11 : i64} {
  func.func @whiten2_kernel(%arg0: i32, %arg1: memref<2x32xf32, #tpu.memory_space<vmem>>, %arg2: memref<2x32xf32, #tpu.memory_space<vmem>>, %arg3: memref<2x32xf32, #tpu.memory_space<vmem>>, %arg4: memref<2x32xf32, #tpu.memory_space<vmem>>, %arg5: memref<2x32xf32, #tpu.memory_space<vmem>>, %arg6: memref<2x32xf32, #tpu.memory_space<vmem>>) attributes {dimension_semantics = [#tpu.dimension_semantics<parallel>], iteration_bounds = array<i64: 1>, scalar_prefetch = 0 : i64, scratch_operands = 0 : i64, tpu.core_type = #tpu.core_type<tc>, window_params = [{transform_indices = @transform_0, window_bounds = array<i64: 2, 32>}, {transform_indices = @transform_1, window_bounds = array<i64: 2, 32>}, {transform_indices = @transform_2, window_bounds = array<i64: 2, 32>}, {transform_indices = @transform_3, window_bounds = array<i64: 2, 32>}, {transform_indices = @transform_4, window_bounds = array<i64: 2, 32>}, {transform_indices = @transform_5, window_bounds = array<i64: 2, 32>}]} {
    %c0 = arith.constant 0 : index
    %c0_0 = arith.constant 0 : index
    %0 = vector.load %arg1[%c0, %c0_0] : memref<2x32xf32, #tpu.memory_space<vmem>>, vector<2x32xf32>
    %c0_1 = arith.constant 0 : index
    %c0_2 = arith.constant 0 : index
    %1 = vector.load %arg2[%c0_1, %c0_2] : memref<2x32xf32, #tpu.memory_space<vmem>>, vector<2x32xf32>
    %c0_3 = arith.constant 0 : index
    %c0_4 = arith.constant 0 : index
    %2 = vector.load %arg3[%c0_3, %c0_4] : memref<2x32xf32, #tpu.memory_space<vmem>>, vector<2x32xf32>
    %3 = arith.addf %0, %1 : vector<2x32xf32>
    %4 = arith.addf %3, %2 : vector<2x32xf32>
    %cst = arith.constant 0.333333343 : f32
    %5 = vector.broadcast %cst : f32 to vector<2x32xf32>
    %6 = arith.mulf %4, %5 : vector<2x32xf32>
    %7 = arith.subf %0, %6 : vector<2x32xf32>
    %c0_5 = arith.constant 0 : index
    %c0_6 = arith.constant 0 : index
    %8 = vector.load %arg4[%c0_5, %c0_6] : memref<2x32xf32, #tpu.memory_space<vmem>>, vector<2x32xf32>
    tpu.vector_store %arg4[%c0_5, %c0_6], %7 {strides = array<i32>} : memref<2x32xf32, #tpu.memory_space<vmem>>, vector<2x32xf32>,
    %9 = arith.subf %1, %6 : vector<2x32xf32>
    %c0_7 = arith.constant 0 : index
    %c0_8 = arith.constant 0 : index
    %10 = vector.load %arg5[%c0_7, %c0_8] : memref<2x32xf32, #tpu.memory_space<vmem>>, vector<2x32xf32>
    tpu.vector_store %arg5[%c0_7, %c0_8], %9 {strides = array<i32>} : memref<2x32xf32, #tpu.memory_space<vmem>>, vector<2x32xf32>,
    %c0_9 = arith.constant 0 : index
    %c0_10 = arith.constant 0 : index
    %11 = vector.load %arg6[%c0_9, %c0_10] : memref<2x32xf32, #tpu.memory_space<vmem>>, vector<2x32xf32>
    tpu.vector_store %arg6[%c0_9, %c0_10], %6 {strides = array<i32>} : memref<2x32xf32, #tpu.memory_space<vmem>>, vector<2x32xf32>,
    return
  }
  func.func @transform_0(%arg0: i32) -> (i32, i32) {
    %c0_i32 = arith.constant 0 : i32
    %c0_i32_0 = arith.constant 0 : i32
    return %arg0, %c0_i32 : i32, i32
  }
  func.func @transform_1(%arg0: i32) -> (i32, i32) {
    %c0_i32 = arith.constant 0 : i32
    %c0_i32_0 = arith.constant 0 : i32
    return %arg0, %c0_i32 : i32, i32
  }
  func.func @transform_2(%arg0: i32) -> (i32, i32) {
    %c0_i32 = arith.constant 0 : i32
    %c0_i32_0 = arith.constant 0 : i32
    return %arg0, %c0_i32 : i32, i32
  }
  func.func @transform_3(%arg0: i32) -> (i32, i32) {
    %c0_i32 = arith.constant 0 : i32
    %c0_i32_0 = arith.constant 0 : i32
    return %arg0, %c0_i32 : i32, i32
  }
  func.func @transform_4(%arg0: i32) -> (i32, i32) {
    %c0_i32 = arith.constant 0 : i32
    %c0_i32_0 = arith.constant 0 : i32
    return %arg0, %c0_i32 : i32, i32
  }
  func.func @transform_5(%arg0: i32) -> (i32, i32) {
    %c0_i32 = arith.constant 0 : i32
    %c0_i32_0 = arith.constant 0 : i32
    return %arg0, %c0_i32 : i32, i32
  }
}

</mosaic_0001>

<bundles_post_ra>
// kernel: tpu_custom_call.1
= control target key start
LH: loop header
LB: loop body
LE: loop exit
PB: predicated region body
PF: predicated region fallthrough
CT: control target
= control target key end

     0   :  { %11 = vsyncpa [#allocation3], 0  ;;  %s285_s0 = inlined_call_operand.hbm [shape: f32[2,32], index: 0, kind: input, shape index: {}]   ;;  %s286_s1 = inlined_call_operand.vmem [shape: f32[2,32], index: 1, kind: input, shape index: {}]   ;;  %s287_s2 = inlined_call_operand.vmem [shape: f32[2,32], index: 2, kind: input, shape index: {}]   ;;  %s288_s3 = inlined_call_operand.hbm [shape: f32[2,32], index: 3, kind: output, shape index: {0}]   ;;  %s289_s4 = inlined_call_operand.hbm [shape: f32[2,32], index: 4, kind: output, shape index: {1}]   ;;  %s290_s5 = inlined_call_operand.hbm [shape: f32[2,32], index: 5, kind: output, shape index: {2}]  }
   0x1   :  { %12 = vsyncpa [#allocation4], 0 }
   0x2   :  { %13 = vsyncpa [#allocation7], 0  ;;  %s183_s18 = smov [#allocation2]   ;;  %s89_s22 = scalar_lea.hbm %s285_s0, 32 }
   0x3   :  { %s20_s19 = sshll.u32 %s183_s18, 4  ;;  %p90_p0 = scmp.ne.s32.totalorder %s285_s0, %s89_s22  ;;  %s21_s19 = int_to_ptr.vmem [resolvable:$true] %s20_s19 }
   0x4   :  { %p93_p1 = scmp.lt.u32.totalorder %s89_s22, %s285_s0 }
   0x6   :  { %p95_p2 = pnand %p93_p1, %p90_p0 }
   0x8   :  { %98 = shalt.err (!%p95_p2)
}
   0x9   :  { %s99_s27 = scalar_lea.vmem %s21_s19, 32  ;;  %p104_p4 = scmp.lt.s32.totalorder %s21_s19, %s21_s19 }
   0xa   :  { %p100_p3 = scmp.ne.s32.totalorder %s21_s19, %s99_s27  ;;  %p105_p5 = scmp.lt.s32.totalorder %s99_s27, %s99_s27 }
   0xc   :  { %p106_p6 = por %p105_p5, %p104_p4 }
   0xe   :  { %p107_p7 = pnand %p106_p6, %p100_p3 }
  0x10   :  { %110 = shalt.err (!%p107_p7)
}
  0x11   :  { %23 = dma.hbm_to_vmem [thread:$0]  %s285_s0, 32, %s21_s19, [#allocation3]  }
  0x12   :  { %177 = dma.done.wait [#allocation3], 32  }
  0x13   :  { %178 = vsyncadd [#allocation3], 4294967264  ;;  %v31_v0 = vld [vmem:[#allocation2] sm:$0x3]  ;;  %vm38_vm0 = vcmask 254976   ;;  %s184_s9 = smov [#allocation6]  }
  0x14   :  { %v32_v1 = vld [vmem:[%s286_s1] sm:$0x3]  ;;  %s59_s10 = sshll.u32 %s184_s9, 4  ;;  %s185_s11 = smov [#allocation5]   ;;  %s60_s10 = int_to_ptr.vmem [resolvable:$true] %s59_s10 }
  0x15   :  { %v33_v2 = vld [vmem:[%s287_s2] sm:$0x3]  ;;  %v34_v3 = vadd.f32 %v32_v1, %v31_v0  ;;  %s49_s12 = sshll.u32 %s185_s11, 4  ;;  %s186_s0 = smov [#allocation8]   ;;  %s235_s12 = int_to_ptr.vmem [resolvable:$true] %s49_s12 }
  0x16   :  { %s69_s13 = sshll.u32 %s186_s0, 4  ;;  %s111_s1 = scalar_lea.vmem %s60_s10, 32  ;;  %s237_s13 = int_to_ptr.vmem [resolvable:$true] %s69_s13 }
  0x17   :  { %v35_v4 = vadd.f32 %v34_v3, %v33_v2  ;;  %p112_p8 = scmp.ne.s32.totalorder %s60_s10, %s111_s1  ;;  %p116_p9 = scmp.lt.s32.totalorder %s60_s10, %s60_s10 }
  0x18   :  { %p117_p10 = scmp.lt.s32.totalorder %s111_s1, %s111_s1 }
  0x19   :  { %v36_v5 = vmul.f32 0.33333334, %v35_v4 }
  0x1a   :  { %p118_p11 = por %p117_p10, %p116_p9 }
  0x1b   :  { %v40_v6 = vsub.f32 %v32_v1, %v36_v5  ;;  %42 = vst.msk [vmem:[#allocation8] sm:$0x3] %vm38_vm0, %v36_v5  ;;  %v37_v7 = vsub.f32 %v31_v0, %v36_v5 }
  0x1c   :  { %p119_p12 = pnand %p118_p11, %p112_p8 }
  0x1d   :  { %41 = vst.msk [vmem:[#allocation6] sm:$0x3] %vm38_vm0, %v40_v6  ;;  %39 = vst.msk [vmem:[#allocation5] sm:$0x3] %vm38_vm0, %v37_v7 }
  0x1e   :  { %122 = shalt.err (!%p119_p12)
}
  0x1f   :  { %s123_s15 = scalar_lea.hbm %s289_s4, 32 }
  0x20   :  { %p124_p13 = scmp.ne.s32.totalorder %s289_s4, %s123_s15  ;;  %p127_p0 = scmp.lt.u32.totalorder %s123_s15, %s289_s4 }
  0x22   :  { %p129_p1 = pnand %p127_p0, %p124_p13 }
  0x24   :  { %132 = shalt.err (!%p129_p1)
}
  0x25   :  { %62 = dma.vmem_to_hbm [thread:$0]  %s60_s10, 32, %s289_s4, [#allocation7]  }
  0x26   :  { %s133_s22 = scalar_lea.vmem %s235_s12, 32  ;;  %p138_p3 = scmp.lt.s32.totalorder %s235_s12, %s235_s12 }
  0x27   :  { %p134_p2 = scmp.ne.s32.totalorder %s235_s12, %s133_s22  ;;  %p139_p4 = scmp.lt.s32.totalorder %s133_s22, %s133_s22 }
  0x29   :  { %p140_p5 = por %p139_p4, %p138_p3 }
  0x2b   :  { %p141_p6 = pnand %p140_p5, %p134_p2 }
  0x2d   :  { %144 = shalt.err (!%p141_p6)
}
  0x2e   :  { %s145_s25 = scalar_lea.hbm %s288_s3, 32 }
  0x2f   :  { %p146_p7 = scmp.ne.s32.totalorder %s288_s3, %s145_s25  ;;  %p149_p8 = scmp.lt.u32.totalorder %s145_s25, %s288_s3 }
  0x31   :  { %p151_p9 = pnand %p149_p8, %p146_p7 }
  0x33   :  { %154 = shalt.err (!%p151_p9)
}
  0x34   :  { %52 = dma.vmem_to_hbm [thread:$0]  %s235_s12, 32, %s288_s3, [#allocation4]  }
  0x35   :  { %s155_s6 = scalar_lea.vmem %s237_s13, 32  ;;  %p160_p11 = scmp.lt.s32.totalorder %s237_s13, %s237_s13 }
  0x36   :  { %p156_p10 = scmp.ne.s32.totalorder %s237_s13, %s155_s6  ;;  %p161_p12 = scmp.lt.s32.totalorder %s155_s6, %s155_s6 }
  0x38   :  { %p162_p13 = por %p161_p12, %p160_p11 }
  0x3a   :  { %p163_p0 = pnand %p162_p13, %p156_p10 }
  0x3c   :  { %166 = shalt.err (!%p163_p0)
}
  0x3d   :  { %s167_s9 = scalar_lea.hbm %s290_s5, 32 }
  0x3e   :  { %p168_p1 = scmp.ne.s32.totalorder %s290_s5, %s167_s9  ;;  %p171_p2 = scmp.lt.u32.totalorder %s167_s9, %s290_s5 }
  0x40   :  { %p173_p3 = pnand %p171_p2, %p168_p1 }
  0x42   :  { %176 = shalt.err (!%p173_p3)
}
  0x43   :  { %72 = dma.vmem_to_hbm [thread:$0]  %s237_s13, 32, %s290_s5, [#allocation7]  }
  0x44   :  { %179 = dma.done.wait [#allocation4], 32  }
  0x45   :  { %180 = vsyncadd [#allocation4], 4294967264 }
  0x46   :  { %181 = dma.done.wait [#allocation7], 64  }
  0x47   :  { %182 = vsyncadd [#allocation7], 4294967232 }
  0x48   :  { %82 = vsyncpa [#allocation3], 1 }
  0x49   :  { %83 = vsyncpa [#allocation4], 1 }
  0x4a   :  { %84 = vsyncpa [#allocation7], 1 }

</bundles_post_ra>
